<compile_context>
chip_gen: v6e
topology: v6e:2x2x1
jax: 0.10.0
libtpu: 0.0.40
codegen_flags: <defaults>
</compile_context>

<pallas_src>
import functools

import jax
import jax.numpy as jnp
from jax.experimental import pallas as pl
from jax.experimental.pallas import tpu as pltpu


# ------------------------------ Pallas kernel -------------------------------

def linear_kernel(x_ref, w_ref, b_ref, o_ref):
    """One (bm, bn) output tile of y = x @ w + b, accumulated over the K axis.

    The output block is resident across the K grid axis, so it doubles as the
    f32 accumulator; the bias is folded into the first-k store.
    """
    partial = jnp.dot(x_ref[...], w_ref[...],
                      preferred_element_type=jnp.float32)

    @pl.when(pl.program_id(2) == 0)
    def _first():
        o_ref[...] = partial + b_ref[...]

    @pl.when(pl.program_id(2) > 0)
    def _rest():
        o_ref[...] += partial


# ------------------------------ shape helpers --------------------------------

def _round_up(x, m):
    return ((x + m - 1) // m) * m


def _choose_block(padded_dim, want, align):
    """Largest multiple of `align` that divides `padded_dim` and is <= want."""
    b = max(align, (min(want, padded_dim) // align) * align)
    while padded_dim % b:
        b -= align
    return b


# ---------------------------- parameter setup --------------------------------

def prepare_params(weight, bias, *, compute_dtype=jnp.bfloat16,
                    n_align=128, k_align=128):
    """One-time prep of nn.Linear params (do this at load time, not per call).

    weight: (out_chann, fc_num) f32, bias: (out_chann,) f32.
    Returns (wt, b2): wt is (Kp, Np) `compute_dtype` (transposed so output
    features sit on the 128-wide lane axis, zero-padded to tile multiples);
    b2 is (1, Np) f32.
    """
    n, k = weight.shape
    kp = _round_up(k, k_align)
    np_ = _round_up(max(n, 1), n_align)
    wt = jnp.zeros((kp, np_), compute_dtype)
    wt = wt.at[:k, :n].set(weight.T.astype(compute_dtype))
    b2 = jnp.zeros((1, np_), jnp.float32)
    b2 = b2.at[0, :n].set(bias.astype(jnp.float32))
    return wt, b2


# -------------------------------- forward ------------------------------------

@functools.partial(jax.jit, static_argnames=("out_features", "tm", "tn", "tk"))
def eegnet_class_forward(x, wt, bias2, *, out_features, tm=128, tn=128, tk=2048):
    """PyTorch nn.Linear semantics: y = x @ weight.T + bias.

    x: (..., fc_num) f32; wt/bias2 come from prepare_params().
    """
    lead = x.shape[:-1]
    k = x.shape[-1]
    kp, np_ = wt.shape
    assert kp == _round_up(k, 128), (k, kp)

    x2 = x.reshape(-1, k).astype(wt.dtype)        # bf16 activations for the MXU
    m = x2.shape[0]
    mp = _round_up(m, 8)
    if (mp, kp) != (m, k):
        x2 = jnp.pad(x2, ((0, mp - m), (0, kp - k)))   # zero-pad: exact result

    bm = _choose_block(mp, tm, 8)
    bn = _choose_block(np_, tn, 128)
    bk = _choose_block(kp, tk, 128)
    grid = (mp // bm, np_ // bn, kp // bk)

    # Deeper buffering on the weight stream in the weight-streaming (deep-K)
    # regime; plain double-buffering otherwise (and at the tiny demo shape).
    if grid[2] >= 3:
        w_spec = pl.BlockSpec((bk, bn), lambda i, j, kk: (kk, j),
                              pipeline_mode=pl.Buffered(3))
    else:
        w_spec = pl.BlockSpec((bk, bn), lambda i, j, kk: (kk, j))

    itm_x = x2.dtype.itemsize
    itm_w = wt.dtype.itemsize
    out2 = pl.pallas_call(
        linear_kernel,
        out_shape=jax.ShapeDtypeStruct((mp, np_), jnp.float32),
        grid_spec=pltpu.PrefetchScalarGridSpec(
            num_scalar_prefetch=0,
            grid=grid,
            in_specs=[
                pl.BlockSpec((bm, bk), lambda i, j, kk: (i, kk)),   # x tile
                w_spec,                                             # W^T tile
                pl.BlockSpec((1, bn), lambda i, j, kk: (0, j)),     # bias tile
            ],
            out_specs=pl.BlockSpec((bm, bn), lambda i, j, kk: (i, j)),
        ),
        compiler_params=pltpu.CompilerParams(
            dimension_semantics=("parallel", "parallel", "arbitrary"),
            # Safe on v7x's 64 MiB physical VMEM; tiles above double-buffer in
            # well under this on every generation.
            vmem_limit_bytes=48 * 1024 * 1024,
        ),
        cost_estimate=pl.CostEstimate(
            flops=2 * mp * np_ * kp,
            transcendentals=0,
            # Tiled schedule: x re-read once per N tile, W re-read once per M
            # tile; bias once per N tile; output written once.
            bytes_accessed=(itm_x * mp * kp * (np_ // bn)
                            + itm_w * kp * np_ * (mp // bm)
                            + 4 * np_ * (np_ // bn)
                            + 4 * mp * np_),
        ),
    )(x2, wt, bias2)

    return out2[:m, :out_features].reshape(*lead, out_features)


# --------------------------------- main --------------------------------------

if __name__ == "__main__":
    # Realistic small head: 248 features -> 4 classes.  Exercises K padding
    # (248 -> 256) and lane padding of the tiny class count (4 -> 128).
    B, fc_num, out_chann = 16, 248, 4
    key = jax.random.PRNGKey(0)
    kx, kw, kb = jax.random.split(key, 3)

    x = jax.random.normal(kx, (B, fc_num), jnp.float32)
    weight = 0.1 * jax.random.normal(kw, (out_chann, fc_num), jnp.float32)
    bias = 0.1 * jax.random.normal(kb, (out_chann,), jnp.float32)

    # One-time parameter prep (transpose + bf16 cast + padding), outside jit.
    wt, b2 = prepare_params(weight, bias)

    out = jax.block_until_ready(
        eegnet_class_forward(x, wt, b2, out_features=out_chann))

    # Reference check against plain XLA f32 linear.  bf16 MXU inputs with f32
    # accumulation => loosened tolerance vs exact f32 PyTorch.
    ref = x @ weight.T + bias
    assert out.shape == (B, out_chann), out.shape
    assert bool(jnp.all(jnp.isfinite(out)))
    assert bool(jnp.allclose(out, ref, rtol=5e-2, atol=5e-2)), (
        float(jnp.max(jnp.abs(out - ref))))
    print("KERNEL_OK")
</pallas_src>

<mosaic_0001>
module attributes {stable_mosaic.version = 11 : i64} {
  func.func @linear_kernel(%arg0: i32, %arg1: i32, %arg2: i32, %arg3: memref<16x256xbf16, #tpu.memory_space<vmem>>, %arg4: memref<256x128xbf16, #tpu.memory_space<vmem>>, %arg5: memref<1x128xf32, #tpu.memory_space<vmem>>, %arg6: memref<16x128xf32, #tpu.memory_space<vmem>>) attributes {dimension_semantics = [#tpu.dimension_semantics<parallel>, #tpu.dimension_semantics<parallel>, #tpu.dimension_semantics<arbitrary>], iteration_bounds = array<i64: 1, 1, 1>, scalar_prefetch = 0 : i64, scratch_operands = 0 : i64, tpu.core_type = #tpu.core_type<tc>, window_params = [{transform_indices = @transform_0, window_bounds = array<i64: 16, 256>}, {transform_indices = @transform_1, window_bounds = array<i64: 256, 128>}, {transform_indices = @transform_2, window_bounds = array<i64: 1, 128>}, {transform_indices = @transform_3, window_bounds = array<i64: 16, 128>}]} {
    %c0 = arith.constant 0 : index
    %c0_0 = arith.constant 0 : index
    %0 = vector.load %arg3[%c0, %c0_0] : memref<16x256xbf16, #tpu.memory_space<vmem>>, vector<16x256xbf16>
    %c0_1 = arith.constant 0 : index
    %c0_2 = arith.constant 0 : index
    %1 = vector.load %arg4[%c0_1, %c0_2] : memref<256x128xbf16, #tpu.memory_space<vmem>>, vector<256x128xbf16>
    %cst = arith.constant dense<0.000000e+00> : vector<16x128xf32>
    %2 = tpu.matmul %0, %1, %cst {dimension_numbers = #tpu.dot_dimension_numbers<[1], [0], [0], [1], [0, 0, 1, 1], [], []>} : vector<16x256xbf16>, vector<256x128xbf16>, vector<16x128xf32> -> vector<16x128xf32>
    %c0_i32 = arith.constant 0 : i32
    %3 = arith.cmpi eq, %arg2, %c0_i32 : i32
    %4 = arith.extui %3 : i1 to i32
    %c0_i32_3 = arith.constant 0 : i32
    %5 = arith.cmpi ne, %4, %c0_i32_3 : i32
    scf.if %5 {
      %c0_6 = arith.constant 0 : index
      %c0_7 = arith.constant 0 : index
      %9 = vector.load %arg5[%c0_6, %c0_7] : memref<1x128xf32, #tpu.memory_space<vmem>>, vector<1x128xf32>
      %10 = vector.broadcast %9 : vector<1x128xf32> to vector<16x128xf32>
      %11 = arith.addf %2, %10 : vector<16x128xf32>
      %c0_8 = arith.constant 0 : index
      %c0_9 = arith.constant 0 : index
      %12 = vector.load %arg6[%c0_8, %c0_9] : memref<16x128xf32, #tpu.memory_space<vmem>>, vector<16x128xf32>
      tpu.vector_store %arg6[%c0_8, %c0_9], %11 {strides = array<i32>} : memref<16x128xf32, #tpu.memory_space<vmem>>, vector<16x128xf32>,
    } else {
    }
    %c0_i32_4 = arith.constant 0 : i32
    %6 = arith.cmpi sgt, %arg2, %c0_i32_4 : i32
    %7 = arith.extui %6 : i1 to i32
    %c0_i32_5 = arith.constant 0 : i32
    %8 = arith.cmpi ne, %7, %c0_i32_5 : i32
    scf.if %8 {
      %c0_6 = arith.constant 0 : index
      %c0_7 = arith.constant 0 : index
      %9 = vector.load %arg6[%c0_6, %c0_7] : memref<16x128xf32, #tpu.memory_space<vmem>>, vector<16x128xf32>
      %10 = arith.addf %9, %2 : vector<16x128xf32>
      %c0_8 = arith.constant 0 : index
      %c0_9 = arith.constant 0 : index
      %11 = vector.load %arg6[%c0_8, %c0_9] : memref<16x128xf32, #tpu.memory_space<vmem>>, vector<16x128xf32>
      tpu.vector_store %arg6[%c0_8, %c0_9], %10 {strides = array<i32>} : memref<16x128xf32, #tpu.memory_space<vmem>>, vector<16x128xf32>,
    } else {
    }
    return
  }
  func.func @transform_0(%arg0: i32, %arg1: i32, %arg2: i32) -> (i32, i32) {
    %c0_i32 = arith.constant 0 : i32
    return %arg0, %arg2 : i32, i32
  }
  func.func @transform_1(%arg0: i32, %arg1: i32, %arg2: i32) -> (i32, i32) {
    %c0_i32 = arith.constant 0 : i32
    return %arg2, %arg1 : i32, i32
  }
  func.func @transform_2(%arg0: i32, %arg1: i32, %arg2: i32) -> (i32, i32) {
    %c0_i32 = arith.constant 0 : i32
    %c0_i32_0 = arith.constant 0 : i32
    return %c0_i32, %arg1 : i32, i32
  }
  func.func @transform_3(%arg0: i32, %arg1: i32, %arg2: i32) -> (i32, i32) {
    %c0_i32 = arith.constant 0 : i32
    return %arg0, %arg1 : i32, i32
  }
}

</mosaic_0001>

<bundles_post_ra>
// kernel: eegnet_class_forward.1
= control target key start
LH: loop header
LB: loop body
LE: loop exit
PB: predicated region body
PF: predicated region fallthrough
CT: control target
= control target key end

     0   :  { %8 = vsyncpa [#allocation3], 0  ;;  %s325_s12 = smov [#allocation2]   ;;  %s366_s0 = inlined_call_operand.vmem [shape: bf16[16,256], index: 0, kind: input, shape index: {}]   ;;  %s367_s1 = inlined_call_operand.hbm [shape: bf16[256,128], index: 1, kind: input, shape index: {}]   ;;  %s368_s2 = inlined_call_operand.vmem [shape: f32[1,128], index: 2, kind: input, shape index: {}]   ;;  %s369_s3 = inlined_call_operand.vmem [shape: f32[16,128], index: 3, kind: output, shape index: {}]  }
   0x1   :  { %s16_s13 = sshll.u32 %s325_s12, 4  ;;  %s17_s13 = int_to_ptr.vmem [resolvable:$true] %s16_s13 }
   0x2   :  { %s311_s14 = scalar_lea.vmem %s17_s13, 2048  ;;  %p316_p1 = scmp.lt.s32.totalorder %s17_s13, %s17_s13 }
   0x3   :  { %p312_p0 = scmp.ne.s32.totalorder %s17_s13, %s311_s14  ;;  %p317_p2 = scmp.lt.s32.totalorder %s311_s14, %s311_s14 }
   0x5   :  { %p318_p3 = por %p317_p2, %p316_p1 }
   0x7   :  { %p319_p4 = pnand %p318_p3, %p312_p0 }
   0x9   :  { %322 = shalt.err (!%p319_p4)
}
   0xa   :  { %s326_s15 = smov 64   ;;  %s327_s16 = smov 4  }
   0xb   :  { %22 = dma.hbm_to_vmem [thread:$0]  %s367_s1, 2048, %s17_s13, [#allocation3], %s326_s15, %s326_s15, %s327_s16  }
   0xc   :  { %323 = dma.done.wait [#allocation3], 2048  }
   0xd   :  { %324 = vsyncadd [#allocation3], 4294965248  ;;  %v284_v0 = vld [vmem:[#allocation2 + $0x78] sm:$0xff]   ;;  %v286_v2 = vld [vmem:[#allocation2 + $0x70] sm:$0xff]  }
   0xe   :  { %v285_v1 = vld [vmem:[#allocation2 + $0x38] sm:$0xff]   ;;  %259 = vmatprep.subr.bf16.mxu0 %v284_v0  ;;  %v287_v3 = vld [vmem:[#allocation2 + $0x30] sm:$0xff]   ;;  %v288_v4 = vld [vmem:[#allocation2 + $0x68] sm:$0xff]  }
   0xf   :  { %260 = vmatpush3.bf16.msra.mxu0 %v285_v1  ;;  %v289_v5 = vld [vmem:[#allocation2 + $0x28] sm:$0xff]   ;;  %v290_v6 = vld [vmem:[#allocation2 + $0x60] sm:$0xff]   ;;  %v292_v8 = vld [vmem:[#allocation2 + $0x58] sm:$0xff]  }
  0x10   :  { %261 = vmatprep.subr.bf16.mxu0 %v286_v2  ;;  %v291_v7 = vld [vmem:[#allocation2 + $0x20] sm:$0xff]   ;;  %v293_v9 = vld [vmem:[#allocation2 + $0x18] sm:$0xff]   ;;  %v294_v10 = vld [vmem:[#allocation2 + $0x50] sm:$0xff]  }
  0x11   :  { %v302_v11 = vld [vmem:[%s366_s0 + $0x4] ss:$8 sps:$4 sm:$0xff]   ;;  %v295_v12 = vld [vmem:[#allocation2 + $0x10] sm:$0xff]   ;;  %v300_v17 = vld [vmem:[%s366_s0] ss:$8 sps:$4 sm:$0xff]  }
  0x12   :  { %201 = vmatprep.mubr.bf16.mxu0 %v302_v11  ;;  %v296_v13 = vld [vmem:[#allocation2 + $0x48] sm:$0xff]   ;;  %v298_v15 = vld [vmem:[#allocation2 + $0x40] sm:$0xff]  }
  0x13   :  { %262 = vmatpush3.bf16.msra.mxu0 %v287_v3  ;;  %v297_v14 = vld [vmem:[#allocation2 + $0x8] sm:$0xff]   ;;  %v299_v16 = vld [vmem:[#allocation2] sm:$0xff]  }
  0x14   :  { %263 = vmatprep.subr.bf16.mxu0 %v288_v4  ;;  %v258_v20 = vld [vmem:[%s368_s2] ss:$0 sm:$0xff] }
  0x17   :  { %264 = vmatpush3.bf16.msra.mxu0 %v289_v5 }
  0x18   :  { %265 = vmatprep.subr.bf16.mxu0 %v290_v6 }
  0x1b   :  { %266 = vmatpush3.bf16.msra.mxu0 %v291_v7 }
  0x1c   :  { %267 = vmatprep.subr.bf16.mxu0 %v292_v8 }
  0x1f   :  { %268 = vmatpush3.bf16.msra.mxu0 %v293_v9 }
  0x20   :  { %269 = vmatprep.subr.bf16.mxu0 %v294_v10 }
  0x23   :  { %270 = vmatpush3.bf16.msra.mxu0 %v295_v12 }
  0x24   :  { %271 = vmatprep.subr.bf16.mxu0 %v296_v13 }
  0x27   :  { %272 = vmatpush3.bf16.msra.mxu0 %v297_v14 }
  0x28   :  { %273 = vmatprep.subr.bf16.mxu0 %v298_v15 }
  0x2b   :  { %274 = vmatpush3.bf16.msra.mxu0 %v299_v16 }
  0x2e   :  { %202 = vmatmul.mubr.bf16.vlgmr.msra.gmra.mxu0 %v300_v17 }
  0xee   :  { %v275_v18 = vpop.f32.mrf.mxu0 }
  0xf0   :  { %v276_v19 = vpop.f32.mrf.mxu0 }
  0xf1   :  { %v277_v21 = vadd.f32 %v276_v19, %v275_v18 }
  0xf2   :  { %v278_v22 = vpop.f32.mrf.mxu0 }
  0xf3   :  { %v221_v23 = vadd.f32 %v277_v21, %v258_v20 }
  0xf4   :  { %v279_v24 = vpop.f32.mrf.mxu0 }
  0xf5   :  { %223 = vst [vmem:[%s369_s3] sm:$0xff] %v221_v23  ;;  %v280_v25 = vadd.f32 %v279_v24, %v278_v22 }
  0xf7   :  { %v222_v26 = vadd.f32 %v280_v25, %v258_v20 }
  0xf9   :  { %224 = vst [vmem:[%s369_s3 + $0x8] sm:$0xff] %v222_v26 }
  0xfa   :  { %239 = vsyncpa [#allocation3], 1 }

</bundles_post_ra>
